<compile_context>
chip_gen: v6e
topology: v6e:2x2x1
jax: 0.10.0
libtpu: 0.0.40
codegen_flags: <defaults>
</compile_context>

<pallas_src>
import math

import jax
import jax.numpy as jnp
from jax import lax
from jax.experimental import pallas as pl
from jax.experimental.pallas import tpu as pltpu


def _round_up(x, m):
    return (x + m - 1) // m * m


# --------------------------------------------------------------------------------------
# Cold path: fold pre_proc + backbone + fc into one [vocab_p, ncls_p] table
#     W[v, :] = (COUNT[v, :] / (relu(sum(COUNT[v, :]) - 1) + 1)) @ w_emb @ w_fc
# Tiled over vocab rows so it keeps compiling at realistic vocab sizes (one-time cost).
# TODO(synk): LagrangeEmbedding source not provided; stand-in is a dense [F, dof]
#             projection (any linear row-wise backbone folds into W the same way).
# --------------------------------------------------------------------------------------
def _table_kernel(count_ref, w_emb_ref, w_fc_ref, w_ref):
    c = count_ref[...]                                        # [v_block, F] f32
    row_sum = jnp.sum(c, axis=1, keepdims=True)
    x = c / (jnp.maximum(row_sum - 1.0, 0.0) + 1.0)           # pre_proc (exact)
    e = jnp.dot(x, w_emb_ref[...], preferred_element_type=jnp.float32)
    w_ref[...] = jnp.dot(e, w_fc_ref[...], preferred_element_type=jnp.float32)


def precompute_table(count, w_emb, w_fc, vocab_p, ncls_p):
    vocab, n_feat = count.shape
    dof = w_emb.shape[1]
    n_cls = w_fc.shape[1]
    dof_p = _round_up(dof, 128)

    count_p = jnp.zeros((vocab_p, n_feat), jnp.float32).at[:vocab].set(
        count.astype(jnp.float32))
    w_emb_p = jnp.zeros((n_feat, dof_p), jnp.float32).at[:, :dof].set(
        w_emb.astype(jnp.float32))
    w_fc_p = jnp.zeros((dof_p, ncls_p), jnp.float32).at[:dof, :n_cls].set(
        w_fc.astype(jnp.float32))

    v_block = math.gcd(vocab_p, 1024)          # multiple of 128, divides vocab_p
    grid = (vocab_p // v_block,)

    return pl.pallas_call(
        _table_kernel,
        out_shape=jax.ShapeDtypeStruct((vocab_p, ncls_p), jnp.float32),
        grid_spec=pltpu.PrefetchScalarGridSpec(
            num_scalar_prefetch=0,
            grid=grid,
            in_specs=[
                pl.BlockSpec((v_block, n_feat), lambda v: (v, 0)),   # COUNT rows (tiled)
                pl.BlockSpec((n_feat, dof_p), lambda v: (0, 0)),     # w_emb (resident)
                pl.BlockSpec((dof_p, ncls_p), lambda v: (0, 0)),     # w_fc (resident)
            ],
            out_specs=pl.BlockSpec((v_block, ncls_p), lambda v: (v, 0)),
        ),
        compiler_params=pltpu.CompilerParams(
            dimension_semantics=("parallel",)),
    )(count_p, w_emb_p, w_fc_p)


# --------------------------------------------------------------------------------------
# Hot path: per-bag token histogram accumulation; finalize applies the fused table once.
# --------------------------------------------------------------------------------------
def _fused_kernel(starts_ref, ends_ref, text_ref, w_tab_ref, out_ref, hist_ref):
    tt = pl.program_id(1)                       # token-tile index (reduction axis, last)
    t_tile = text_ref.shape[0]
    b_tile = starts_ref.shape[0]
    vocab_p = w_tab_ref.shape[0]

    @pl.when(tt == 0)
    def _():
        hist_ref[...] = jnp.zeros_like(hist_ref)

    # One-hot token indicator for this token tile (cheap VPU compares, no table involved).
    tok = text_ref[...]                                                   # [T_TILE, 1] int32
    vocab_iota = lax.broadcasted_iota(jnp.int32, (t_tile, vocab_p), 1)
    onehot = (vocab_iota == tok).astype(jnp.bfloat16)                     # [T_TILE, VOCAB_P]

    # Segment-membership mask of this token tile against the bag [start, end) ranges.
    starts = starts_ref[...]                                              # [B_TILE, 1] int32
    ends = ends_ref[...]                                                  # [B_TILE, 1] int32
    t_global = tt * t_tile + lax.broadcasted_iota(jnp.int32, (b_tile, t_tile), 1)
    mask = ((t_global >= starts) & (t_global < ends)).astype(jnp.bfloat16)  # [B_TILE, T_TILE]

    # hist[b, v] = #tokens with id v inside bag b.  bf16 0/1 inputs, f32 accumulate: exact.
    hist_ref[...] += jnp.dot(mask, onehot, preferred_element_type=jnp.float32)

    @pl.when(tt == pl.num_programs(1) - 1)
    def _():
        lens = (ends - starts).astype(jnp.float32)                        # [B_TILE, 1]
        inv = 1.0 / (jnp.maximum(lens - 1.0, 0.0) + 1.0)                  # exact; finalize only
        bag_mean = hist_ref[...] * inv                                    # [B_TILE, VOCAB_P] f32
        # Single folded matmul: pre_proc + backbone + fc all absorbed into w_tab.
        out_ref[...] = jnp.dot(bag_mean, w_tab_ref[...],
                               preferred_element_type=jnp.float32)        # [B_TILE, NCLS_P]


def text_classification_forward(text, offsets, count, w_emb, w_fc,
                                *, t_tile=256, b_tile=None):
    """text: int32 [T]; offsets: int32 [B+1] with offsets[0]=0, offsets[-1]=T."""
    T = text.shape[0]
    B = offsets.shape[0] - 1
    vocab, _ = count.shape
    n_cls = w_fc.shape[1]

    vocab_p = _round_up(vocab, 128)
    ncls_p = _round_up(n_cls, 128)
    t_pad = _round_up(T, t_tile)
    if b_tile is None:
        # Full MXU rows for large batches; avoid wasted padded-row MXU work for small B.
        b_tile = min(128, _round_up(B, 8))
    b_pad = _round_up(B, b_tile)

    # Cold path: fused [vocab_p, ncls_p] table in f32 (tiny; accuracy is free here).
    w_tab = precompute_table(count, w_emb, w_fc, vocab_p, ncls_p)

    # Token ids as a [T_pad, 1] column (sublane-major => no in-kernel transpose).
    text_col = jnp.zeros((t_pad, 1), jnp.int32).at[:T, 0].set(text.astype(jnp.int32))
    # Per-bag [start, end) columns; padded bags are empty (start == end == T -> output 0)
    # and padded token positions (>= T) fall outside every range, so they never leak.
    starts = jnp.full((b_pad, 1), T, jnp.int32).at[:B, 0].set(offsets[:-1].astype(jnp.int32))
    ends = jnp.full((b_pad, 1), T, jnp.int32).at[:B, 0].set(offsets[1:].astype(jnp.int32))

    n_b = b_pad // b_tile
    n_t = t_pad // t_tile

    grid_spec = pltpu.PrefetchScalarGridSpec(
        num_scalar_prefetch=0,
        grid=(n_b, n_t),
        in_specs=[
            pl.BlockSpec((b_tile, 1), lambda bb, tt: (bb, 0)),        # bag starts
            pl.BlockSpec((b_tile, 1), lambda bb, tt: (bb, 0)),        # bag ends
            pl.BlockSpec((t_tile, 1), lambda bb, tt: (tt, 0)),        # token ids (tiled over T)
            pl.BlockSpec((vocab_p, ncls_p), lambda bb, tt: (0, 0)),   # fused table (resident)
        ],
        out_specs=pl.BlockSpec((b_tile, ncls_p), lambda bb, tt: (bb, 0)),
        # TODO(synk): for very large vocab (>~16K) tile the histogram over vocab blocks
        # (extra grid axis) or switch to a DMA row-gather of w_tab instead of one-hot.
        scratch_shapes=[pltpu.VMEM((b_tile, vocab_p), jnp.float32)],  # per-bag-block histogram
    )

    out_p = pl.pallas_call(
        _fused_kernel,
        out_shape=jax.ShapeDtypeStruct((b_pad, ncls_p), jnp.float32),
        grid_spec=grid_spec,
        compiler_params=pltpu.CompilerParams(
            dimension_semantics=("parallel", "arbitrary"),  # bags parallel, tokens reduce
            vmem_limit_bytes=48 * 1024 * 1024,              # headroom on v7x's 64 MiB VMEM
        ),
    )(starts, ends, text_col, w_tab)

    return out_p[:B, :n_cls]


# --------------------------------------------------------------------------------------
# Pure-JAX f32 mirror of the PyTorch forward (cumsum-based post_proc), for checking.
# --------------------------------------------------------------------------------------
def reference_forward(text, offsets, count, w_emb, w_fc):
    data = count[text, :].astype(jnp.float32)
    data = data / (jnp.maximum(jnp.sum(data, axis=1, keepdims=True) - 1.0, 0.0) + 1.0)
    x = data @ w_emb
    cums = jnp.cumsum(x, axis=0)
    first = cums[offsets[1] - 1][None, :]
    rest = cums[offsets[2:] - 1] - cums[offsets[1:-1] - 1]
    x = jnp.concatenate([first, rest], axis=0)
    x = x / (jnp.maximum(offsets[1:] - offsets[:-1] - 1, 0) + 1)[:, None].astype(jnp.float32)
    return x @ w_fc


if __name__ == "__main__":
    # Small shapes consistent with the forward.
    vocab, n_feat = 32, 16          # COUNT: [vocab, n_feat]
    dof, n_cls = 64, 8              # model widths (dof=64 as in the source)
    T, B = 200, 4                   # tokens, bags

    key = jax.random.PRNGKey(0)
    k1, k2, k3, k4 = jax.random.split(key, 4)

    count = jax.random.uniform(k1, (vocab, n_feat), jnp.float32, 0.0, 5.0)   # COUNT (non-negative)
    w_emb = 0.1 * jax.random.normal(k2, (n_feat, dof), jnp.float32)          # backbone stand-in
    w_fc = 0.1 * jax.random.normal(k3, (dof, n_cls), jnp.float32)            # fc weight [dof, n_cls]

    text = jax.random.randint(k4, (T,), 0, vocab, jnp.int32)
    offsets = jnp.array([0, 50, 110, 160, T], dtype=jnp.int32)               # B+1 boundaries

    out = text_classification_forward(text, offsets, count, w_emb, w_fc)
    out = jax.block_until_ready(out)

    ref = reference_forward(text, offsets, count, w_emb, w_fc)
    assert out.shape == (B, n_cls)
    # Hot path is exact (0/1 histogram matmul, exact divides); remaining deviation is
    # only f32 matmul ordering, so tolerance tightens from 1e-2 to 2e-3.
    assert jnp.allclose(out, ref, atol=2e-3, rtol=2e-3), (
        f"max abs err = {jnp.max(jnp.abs(out - ref))}")

    print("KERNEL_OK")
</pallas_src>

<mosaic_0001>
module attributes {stable_mosaic.version = 11 : i64} {
  func.func @_table_kernel(%arg0: i32, %arg1: memref<128x16xf32, #tpu.memory_space<vmem>>, %arg2: memref<16x128xf32, #tpu.memory_space<vmem>>, %arg3: memref<128x128xf32, #tpu.memory_space<vmem>>, %arg4: memref<128x128xf32, #tpu.memory_space<vmem>>) attributes {dimension_semantics = [#tpu.dimension_semantics<parallel>], iteration_bounds = array<i64: 1>, scalar_prefetch = 0 : i64, scratch_operands = 0 : i64, tpu.core_type = #tpu.core_type<tc>, window_params = [{transform_indices = @transform_0, window_bounds = array<i64: 128, 16>}, {pipeline_mode = #tpu.pipeline_mode<synchronous>, transform_indices = @transform_1, window_bounds = array<i64: 16, 128>}, {pipeline_mode = #tpu.pipeline_mode<synchronous>, transform_indices = @transform_2, window_bounds = array<i64: 128, 128>}, {transform_indices = @transform_3, window_bounds = array<i64: 128, 128>}]} {
    %c0 = arith.constant 0 : index
    %c0_0 = arith.constant 0 : index
    %0 = vector.load %arg1[%c0, %c0_0] : memref<128x16xf32, #tpu.memory_space<vmem>>, vector<128x16xf32>
    %cst = arith.constant dense<0.000000e+00> : vector<128xf32>
    %1 = vector.multi_reduction <add>, %0, %cst [1] : vector<128x16xf32> to vector<128xf32>
    %2 = vector.shape_cast %1 : vector<128xf32> to vector<128x1xf32>
    %cst_1 = arith.constant 1.000000e+00 : f32
    %3 = vector.broadcast %cst_1 : f32 to vector<128x1xf32>
    %4 = arith.subf %2, %3 : vector<128x1xf32>
    %cst_2 = arith.constant 0.000000e+00 : f32
    %5 = vector.broadcast %cst_2 : f32 to vector<128x1xf32>
    %6 = arith.maximumf %4, %5 : vector<128x1xf32>
    %cst_3 = arith.constant 1.000000e+00 : f32
    %7 = vector.broadcast %cst_3 : f32 to vector<128x1xf32>
    %8 = arith.addf %6, %7 : vector<128x1xf32>
    %9 = vector.broadcast %8 : vector<128x1xf32> to vector<128x16xf32>
    %10 = arith.divf %0, %9 : vector<128x16xf32>
    %c0_4 = arith.constant 0 : index
    %c0_5 = arith.constant 0 : index
    %11 = vector.load %arg2[%c0_4, %c0_5] : memref<16x128xf32, #tpu.memory_space<vmem>>, vector<16x128xf32>
    %cst_6 = arith.constant dense<0.000000e+00> : vector<128x128xf32>
    %12 = tpu.matmul %10, %11, %cst_6 {dimension_numbers = #tpu.dot_dimension_numbers<[1], [0], [0], [1], [0, 0, 1, 1], [], []>} : vector<128x16xf32>, vector<16x128xf32>, vector<128x128xf32> -> vector<128x128xf32>
    %c0_7 = arith.constant 0 : index
    %c0_8 = arith.constant 0 : index
    %13 = vector.load %arg3[%c0_7, %c0_8] : memref<128x128xf32, #tpu.memory_space<vmem>>, vector<128x128xf32>
    %cst_9 = arith.constant dense<0.000000e+00> : vector<128x128xf32>
    %14 = tpu.matmul %12, %13, %cst_9 {dimension_numbers = #tpu.dot_dimension_numbers<[1], [0], [0], [1], [0, 0, 1, 1], [], []>} : vector<128x128xf32>, vector<128x128xf32>, vector<128x128xf32> -> vector<128x128xf32>
    %c0_10 = arith.constant 0 : index
    %c0_11 = arith.constant 0 : index
    %15 = vector.load %arg4[%c0_10, %c0_11] : memref<128x128xf32, #tpu.memory_space<vmem>>, vector<128x128xf32>
    tpu.vector_store %arg4[%c0_10, %c0_11], %14 {strides = array<i32>} : memref<128x128xf32, #tpu.memory_space<vmem>>, vector<128x128xf32>,
    return
  }
  func.func @transform_0(%arg0: i32) -> (i32, i32) {
    %c0_i32 = arith.constant 0 : i32
    %c0_i32_0 = arith.constant 0 : i32
    return %arg0, %c0_i32 : i32, i32
  }
  func.func @transform_1(%arg0: i32) -> (i32, i32) {
    %c0_i32 = arith.constant 0 : i32
    %c0_i32_0 = arith.constant 0 : i32
    %c0_i32_1 = arith.constant 0 : i32
    return %c0_i32, %c0_i32_0 : i32, i32
  }
  func.func @transform_2(%arg0: i32) -> (i32, i32) {
    %c0_i32 = arith.constant 0 : i32
    %c0_i32_0 = arith.constant 0 : i32
    %c0_i32_1 = arith.constant 0 : i32
    return %c0_i32, %c0_i32_0 : i32, i32
  }
  func.func @transform_3(%arg0: i32) -> (i32, i32) {
    %c0_i32 = arith.constant 0 : i32
    %c0_i32_0 = arith.constant 0 : i32
    return %arg0, %c0_i32 : i32, i32
  }
}

</mosaic_0001>

<bundles_post_ra>
// kernel: tpu_custom_call.1
= control target key start
LH: loop header
LB: loop body
LE: loop exit
PB: predicated region body
PF: predicated region fallthrough
CT: control target
= control target key end

     0   :  { %vm31_vm0 = vcmask 130048   ;;  %s1111_s0 = inlined_call_operand.vmem [shape: f32[128,16], index: 0, kind: input, shape index: {}]   ;;  %s1112_s1 = inlined_call_operand.vmem [shape: f32[16,128], index: 1, kind: input, shape index: {}]   ;;  %s1113_s2 = inlined_call_operand.vmem [shape: f32[128,128], index: 2, kind: input, shape index: {}]   ;;  %s1114_s3 = inlined_call_operand.hbm [shape: f32[128,128], index: 3, kind: output, shape index: {}]  }
   0x1   :  { %v829_v0 = vld [vmem:[%s1111_s0] sm:$0xff]  ;;  %v834_v1 = vld [vmem:[%s1111_s0 + $0x10] sm:$0xff]  ;;  %v839_v2 = vld [vmem:[%s1111_s0 + $0x8] sm:$0xff] }
   0x2   :  { %v32_v3 = vsel %vm31_vm0, %v829_v0, 0.0  ;;  %v38_v4 = vsel %vm31_vm0, %v834_v1, 0.0  ;;  %v848_v5 = vld [vmem:[%s1111_s0 + $0x18] sm:$0xff]  ;;  %v35_v6 = vsel %vm31_vm0, %v839_v2, 0.0  ;;  %v857_v8 = vld [vmem:[%s1111_s0 + $0x20] sm:$0xff]  ;;  %v862_v9 = vld [vmem:[%s1111_s0 + $0x28] sm:$0xff] }
   0x3   :  { %33 = vadd.xlane.f32.xlu0 %v32_v3  ;;  %39 = vadd.xlane.f32.xlu1 %v38_v4  ;;  %v41_v7 = vsel %vm31_vm0, %v848_v5, 0.0 }
   0x4   :  { %8 = vsyncpa [#allocation3], 0  ;;  %v44_v10 = vsel %vm31_vm0, %v857_v8, 0.0  ;;  %v47_v11 = vsel %vm31_vm0, %v862_v9, 0.0  ;;  %v871_v12 = vld [vmem:[%s1111_s0 + $0x30] sm:$0xff]  ;;  %v876_v13 = vld [vmem:[%s1111_s0 + $0x38] sm:$0xff] }
   0x5   :  { %v50_v14 = vsel %vm31_vm0, %v871_v12, 0.0  ;;  %v53_v15 = vsel %vm31_vm0, %v876_v13, 0.0  ;;  %v885_v16 = vld [vmem:[%s1111_s0 + $0x40] sm:$0xff]  ;;  %v890_v17 = vld [vmem:[%s1111_s0 + $0x48] sm:$0xff]  ;;  %v899_v20 = vld [vmem:[%s1111_s0 + $0x50] sm:$0xff] }
   0x6   :  { %v56_v18 = vsel %vm31_vm0, %v885_v16, 0.0  ;;  %v59_v19 = vsel %vm31_vm0, %v890_v17, 0.0  ;;  %v904_v21 = vld [vmem:[%s1111_s0 + $0x58] sm:$0xff]  ;;  %v62_v22 = vsel %vm31_vm0, %v899_v20, 0.0  ;;  %v913_v24 = vld [vmem:[%s1111_s0 + $0x60] sm:$0xff]  ;;  %v918_v25 = vld [vmem:[%s1111_s0 + $0x68] sm:$0xff] }
   0x7   :  { %36 = vadd.xlane.f32.xlu0 %v35_v6  ;;  %42 = vadd.xlane.f32.xlu1 %v41_v7  ;;  %v65_v23 = vsel %vm31_vm0, %v904_v21, 0.0  ;;  %v68_v26 = vsel %vm31_vm0, %v913_v24, 0.0  ;;  %v71_v27 = vsel %vm31_vm0, %v918_v25, 0.0  ;;  %v927_v28 = vld [vmem:[%s1111_s0 + $0x70] sm:$0xff]  ;;  %v932_v29 = vld [vmem:[%s1111_s0 + $0x78] sm:$0xff]  ;;  %v161_v32 = vld [vmem:[%s1112_s1 + $0x8] sm:$0xff] }
   0x8   :  { %v74_v30 = vsel %vm31_vm0, %v927_v28, 0.0  ;;  %v77_v31 = vsel %vm31_vm0, %v932_v29, 0.0  ;;  %630 = vmatprep.subr.mxu0 %v161_v32  ;;  %v160_v33 = vld [vmem:[%s1112_s1] sm:$0xff]  ;;  %v947_v34 = vld [vmem:[%s1113_s2 + $0x78] sm:$0xff]  ;;  %v954_v35 = vld [vmem:[%s1113_s2 + $0x70] sm:$0xff] }
   0x9   :  { %631 = vmatpush3.msra.mxu0 %v161_v32  ;;  %714 = vmatprep.subr.mxu1 %v947_v34  ;;  %v961_v36 = vld [vmem:[%s1113_s2 + $0x68] sm:$0xff]  ;;  %v968_v37 = vld [vmem:[%s1113_s2 + $0x60] sm:$0xff]  ;;  %v975_v38 = vld [vmem:[%s1113_s2 + $0x58] sm:$0xff] }
   0xa   :  { %632 = vmatprep.subr.mxu0 %v160_v33  ;;  %730 = vmatpush3.msra.mxu1 %v947_v34  ;;  %v982_v39 = vld [vmem:[%s1113_s2 + $0x50] sm:$0xff]  ;;  %v989_v40 = vld [vmem:[%s1113_s2 + $0x48] sm:$0xff]  ;;  %v996_v41 = vld [vmem:[%s1113_s2 + $0x40] sm:$0xff] }
   0xb   :  { %45 = vadd.xlane.f32.xlu0 %v44_v10  ;;  %48 = vadd.xlane.f32.xlu1 %v47_v11  ;;  %v1003_v42 = vld [vmem:[%s1113_s2 + $0x38] sm:$0xff]  ;;  %v1010_v43 = vld [vmem:[%s1113_s2 + $0x30] sm:$0xff]  ;;  %v1017_v44 = vld [vmem:[%s1113_s2 + $0x28] sm:$0xff] }
   0xc   :  { %633 = vmatpush3.msra.mxu0 %v160_v33  ;;  %715 = vmatprep.subr.mxu1 %v954_v35  ;;  %v1024_v45 = vld [vmem:[%s1113_s2 + $0x20] sm:$0xff]  ;;  %v1031_v46 = vld [vmem:[%s1113_s2 + $0x18] sm:$0xff]  ;;  %v1038_v47 = vld [vmem:[%s1113_s2 + $0x10] sm:$0xff] }
   0xd   :  { %658 = vmatprep.subr.mxu0 %v947_v34  ;;  %731 = vmatpush3.msra.mxu1 %v954_v35 }
   0xe   :  { %716 = vmatprep.subr.mxu1 %v961_v36 }
   0xf   :  { %51 = vadd.xlane.f32.xlu0 %v50_v14  ;;  %54 = vadd.xlane.f32.xlu1 %v53_v15 }
  0x10   :  { %732 = vmatpush3.msra.mxu1 %v961_v36 }
  0x11   :  { %717 = vmatprep.subr.mxu1 %v968_v37 }
  0x12   :  { %733 = vmatpush3.msra.mxu1 %v968_v37 }
  0x13   :  { %57 = vadd.xlane.f32.xlu0 %v56_v18  ;;  %60 = vadd.xlane.f32.xlu1 %v59_v19 }
  0x14   :  { %718 = vmatprep.subr.mxu1 %v975_v38 }
  0x15   :  { %734 = vmatpush3.msra.mxu1 %v975_v38 }
  0x16   :  { %719 = vmatprep.subr.mxu1 %v982_v39 }
  0x17   :  { %63 = vadd.xlane.f32.xlu0 %v62_v22  ;;  %66 = vadd.xlane.f32.xlu1 %v65_v23 }
  0x18   :  { %735 = vmatpush3.msra.mxu1 %v982_v39 }
  0x19   :  { %720 = vmatprep.subr.mxu1 %v989_v40 }
  0x1a   :  { %736 = vmatpush3.msra.mxu1 %v989_v40 }
  0x1b   :  { %69 = vadd.xlane.f32.xlu0 %v68_v26  ;;  %72 = vadd.xlane.f32.xlu1 %v71_v27 }
  0x1c   :  { %721 = vmatprep.subr.mxu1 %v996_v41 }
  0x1d   :  { %737 = vmatpush3.msra.mxu1 %v996_v41 }
  0x1e   :  { %722 = vmatprep.subr.mxu1 %v1003_v42 }
  0x1f   :  { %75 = vadd.xlane.f32.xlu0 %v74_v30  ;;  %78 = vadd.xlane.f32.xlu1 %v77_v31 }
  0x20   :  { %738 = vmatpush3.msra.mxu1 %v1003_v42 }
  0x21   :  { %723 = vmatprep.subr.mxu1 %v1010_v43 }
  0x22   :  { %739 = vmatpush3.msra.mxu1 %v1010_v43 }
  0x23   :  { %724 = vmatprep.subr.mxu1 %v1017_v44 }
  0x24   :  { %740 = vmatpush3.msra.mxu1 %v1017_v44 }
  0x25   :  { %725 = vmatprep.subr.mxu1 %v1024_v45 }
  0x26   :  { %741 = vmatpush3.msra.mxu1 %v1024_v45 }
  0x27   :  { %726 = vmatprep.subr.mxu1 %v1031_v46 }
  0x28   :  { %742 = vmatpush3.msra.mxu1 %v1031_v46 }
  0x29   :  { %727 = vmatprep.subr.mxu1 %v1038_v47 }
  0x2a   :  { %743 = vmatpush3.msra.mxu1 %v1038_v47 }
  0x8c   :  { %v34_v48 = vpop.xlane.xlu0 %33  ;;  %v40_v49 = vpop.xlane.xlu1 %39 }
  0x8d   :  { %v548_v50 = vadd.f32 -1.0, %v34_v48  ;;  %v550_v51 = vadd.f32 -1.0, %v40_v49 }
  0x8f   :  { %v96_v52 = vmax.f32 %v548_v50, 0.0  ;;  %v98_v53 = vmax.f32 %v550_v51, 0.0 }
  0x90   :  { %v37_v54 = vpop.xlane.xlu0 %36  ;;  %v43_v55 = vpop.xlane.xlu1 %42 }
  0x91   :  { %v112_v56 = vadd.f32 1.0, %v96_v52  ;;  %v114_v57 = vadd.f32 1.0, %v98_v53  ;;  %v549_v58 = vadd.f32 -1.0, %v37_v54  ;;  %v551_v59 = vadd.f32 -1.0, %v43_v55 }
  0x93   :  { %749 = vrcp.f32 %v112_v56  ;;  %v97_v60 = vmax.f32 %v549_v58, 0.0  ;;  %v99_v61 = vmax.f32 %v551_v59, 0.0 }
  0x94   :  { %751 = vrcp.f32 %v114_v57  ;;  %v46_v62 = vpop.xlane.xlu0 %45  ;;  %v49_v63 = vpop.xlane.xlu1 %48 }
  0x95   :  { %v113_v3 = vadd.f32 1.0, %v97_v60  ;;  %v115_v4 = vadd.f32 1.0, %v99_v61  ;;  %v552_v6 = vadd.f32 -1.0, %v46_v62  ;;  %v553_v7 = vadd.f32 -1.0, %v49_v63 }
  0x97   :  { %753 = vrcp.f32 %v113_v3  ;;  %v100_v10 = vmax.f32 %v552_v6, 0.0  ;;  %v101_v11 = vmax.f32 %v553_v7, 0.0 }
  0x98   :  { %755 = vrcp.f32 %v115_v4  ;;  %v52_v14 = vpop.xlane.xlu0 %51  ;;  %v55_v15 = vpop.xlane.xlu1 %54 }
  0x99   :  { %v116_v18 = vadd.f32 1.0, %v100_v10  ;;  %v117_v19 = vadd.f32 1.0, %v101_v11  ;;  %v554_v22 = vadd.f32 -1.0, %v52_v14  ;;  %v555_v23 = vadd.f32 -1.0, %v55_v15 }
  0x9b   :  { %757 = vrcp.f32 %v116_v18  ;;  %v102_v26 = vmax.f32 %v554_v22, 0.0  ;;  %v103_v27 = vmax.f32 %v555_v23, 0.0 }
  0x9c   :  { %759 = vrcp.f32 %v117_v19  ;;  %v58_v30 = vpop.xlane.xlu0 %57  ;;  %v61_v31 = vpop.xlane.xlu1 %60 }
  0x9d   :  { %v118_v32 = vadd.f32 1.0, %v102_v26  ;;  %v119_v33 = vadd.f32 1.0, %v103_v27  ;;  %v556_v48 = vadd.f32 -1.0, %v58_v30  ;;  %v557_v49 = vadd.f32 -1.0, %v61_v31 }
  0x9f   :  { %761 = vrcp.f32 %v118_v32  ;;  %v104_v50 = vmax.f32 %v556_v48, 0.0  ;;  %v105_v51 = vmax.f32 %v557_v49, 0.0 }
  0xa0   :  { %v750_v52 = vpop.eup %749  ;;  %763 = vrcp.f32 %v119_v33  ;;  %v64_v53 = vpop.xlane.xlu0 %63 }
  0xa1   :  { %v67_v54 = vpop.xlane.xlu1 %66  ;;  %v752_v55 = vpop.eup %751  ;;  %v120_v56 = vadd.f32 1.0, %v104_v50  ;;  %v121_v57 = vadd.f32 1.0, %v105_v51  ;;  %v129_v58 = vmul.f32 %v750_v52, %v829_v0  ;;  %v558_v59 = vadd.f32 -1.0, %v64_v53 }
  0xa2   :  { %v559_v60 = vadd.f32 -1.0, %v67_v54  ;;  %v133_v6 = vmul.f32 %v752_v55, %v834_v1 }
  0xa3   :  { %765 = vrcp.f32 %v120_v56  ;;  %634 = vmatprep.mubr.msk.f32.mxu0 %vm31_vm0, %v129_v58  ;;  %v106_v61 = vmax.f32 %v558_v59, 0.0 }
  0xa4   :  { %v754_v62 = vpop.eup %753  ;;  %767 = vrcp.f32 %v121_v57  ;;  %v107_v63 = vmax.f32 %v559_v60, 0.0  ;;  %v70_v3 = vpop.xlane.xlu0 %69 }
  0xa5   :  { %v73_v4 = vpop.xlane.xlu1 %72  ;;  %v756_v7 = vpop.eup %755  ;;  %v122_v10 = vadd.f32 1.0, %v106_v61  ;;  %v131_v11 = vmul.f32 %v754_v62, %v839_v2  ;;  %v560_v14 = vadd.f32 -1.0, %v70_v3 }
  0xa6   :  { %v561_v15 = vadd.f32 -1.0, %v73_v4  ;;  %v123_v0 = vadd.f32 1.0, %v107_v63  ;;  %v135_v22 = vmul.f32 %v756_v7, %v848_v5 }
  0xa7   :  { %769 = vrcp.f32 %v122_v10  ;;  %635 = vmatmul.mubr.msk.f32.vlgmr.msra.gmra.mxu0 %vm31_vm0, %v131_v11  ;;  %v108_v18 = vmax.f32 %v560_v14, 0.0 }
  0xa8   :  { %v109_v19 = vmax.f32 %v561_v15, 0.0  ;;  %v758_v23 = vpop.eup %757  ;;  %771 = vrcp.f32 %v123_v0  ;;  %637 = vmatprep.mubr.msk.f32.mxu0 %vm31_vm0, %v133_v6  ;;  %v76_v26 = vpop.xlane.xlu0 %75  ;;  %659 = vmatpush3.msra.mxu0 %v947_v34 }
  0xa9   :  { %v79_v1 = vpop.xlane.xlu1 %78  ;;  %v760_v27 = vpop.eup %759  ;;  %v124_v2 = vadd.f32 1.0, %v108_v18  ;;  %v562_v31 = vadd.f32 -1.0, %v76_v26  ;;  %660 = vmatprep.subr.mxu0 %v954_v35  ;;  %v137_v33 = vmul.f32 %v758_v23, %v857_v8 }
  0xaa   :  { %v125_v30 = vadd.f32 1.0, %v109_v19  ;;  %v563_v32 = vadd.f32 -1.0, %v79_v1  ;;  %661 = vmatpush3.msra.mxu0 %v954_v35  ;;  %v139_v49 = vmul.f32 %v760_v27, %v862_v9 }
  0xab   :  { %773 = vrcp.f32 %v124_v2  ;;  %638 = vmatmul.mubr.msk.f32.gmra.mxu0 %vm31_vm0, %v135_v22  ;;  %v110_v5 = vmax.f32 %v562_v31, 0.0  ;;  %662 = vmatprep.subr.mxu0 %v961_v36 }
  0xac   :  { %v111_v48 = vmax.f32 %v563_v32, 0.0  ;;  %v762_v34 = vpop.eup %761  ;;  %775 = vrcp.f32 %v125_v30  ;;  %640 = vmatprep.mubr.msk.f32.mxu0 %vm31_vm0, %v137_v33  ;;  %663 = vmatpush3.msra.mxu0 %v961_v36 }
  0xad   :  { %v764_v50 = vpop.eup %763  ;;  %v126_v51 = vadd.f32 1.0, %v110_v5  ;;  %v141_v35 = vmul.f32 %v762_v34, %v871_v12  ;;  %664 = vmatprep.subr.mxu0 %v968_v37 }
  0xae   :  { %v127_v8 = vadd.f32 1.0, %v111_v48  ;;  %665 = vmatpush3.msra.mxu0 %v968_v37  ;;  %v143_v9 = vmul.f32 %v764_v50, %v876_v13 }
  0xaf   :  { %777 = vrcp.f32 %v126_v51  ;;  %641 = vmatmul.mubr.msk.f32.gmra.mxu0 %vm31_vm0, %v139_v49  ;;  %666 = vmatprep.subr.mxu0 %v975_v38 }
  0xb0   :  { %v766_v52 = vpop.eup %765  ;;  %779 = vrcp.f32 %v127_v8  ;;  %643 = vmatprep.mubr.msk.f32.mxu0 %vm31_vm0, %v141_v35  ;;  %667 = vmatpush3.msra.mxu0 %v975_v38 }
  0xb1   :  { %v768_v36 = vpop.eup %767  ;;  %v145_v12 = vmul.f32 %v766_v52, %v885_v16  ;;  %668 = vmatprep.subr.mxu0 %v982_v39 }
  0xb2   :  { %669 = vmatpush3.msra.mxu0 %v982_v39  ;;  %v147_v37 = vmul.f32 %v768_v36, %v890_v17 }
  0xb3   :  { %644 = vmatmul.mubr.msk.f32.gmra.mxu0 %vm31_vm0, %v143_v9  ;;  %670 = vmatprep.subr.mxu0 %v989_v40 }
  0xb4   :  { %v770_v13 = vpop.eup %769  ;;  %646 = vmatprep.mubr.msk.f32.mxu0 %vm31_vm0, %v145_v12  ;;  %671 = vmatpush3.msra.mxu0 %v989_v40 }
  0xb5   :  { %v772_v53 = vpop.eup %771  ;;  %v149_v38 = vmul.f32 %v770_v13, %v899_v20  ;;  %672 = vmatprep.subr.mxu0 %v996_v41 }
  0xb6   :  { %673 = vmatpush3.msra.mxu0 %v996_v41  ;;  %v151_v16 = vmul.f32 %v772_v53, %v904_v21 }
  0xb7   :  { %647 = vmatmul.mubr.msk.f32.gmra.mxu0 %vm31_vm0, %v147_v37  ;;  %674 = vmatprep.subr.mxu0 %v1003_v42 }
  0xb8   :  { %v774_v17 = vpop.eup %773  ;;  %649 = vmatprep.mubr.msk.f32.mxu0 %vm31_vm0, %v149_v38  ;;  %675 = vmatpush3.msra.mxu0 %v1003_v42 }
  0xb9   :  { %v776_v39 = vpop.eup %775  ;;  %v153_v40 = vmul.f32 %v774_v17, %v913_v24  ;;  %676 = vmatprep.subr.mxu0 %v1010_v43 }
  0xba   :  { %677 = vmatpush3.msra.mxu0 %v1010_v43  ;;  %v155_v20 = vmul.f32 %v776_v39, %v918_v25  ;;  %v356_v25 = vld [vmem:[%s1113_s2 + $0x8] sm:$0xff] }
  0xbb   :  { %650 = vmatmul.mubr.msk.f32.gmra.mxu0 %vm31_vm0, %v151_v16  ;;  %678 = vmatprep.subr.mxu0 %v1017_v44 }
  0xbc   :  { %v778_v21 = vpop.eup %777  ;;  %652 = vmatprep.mubr.msk.f32.mxu0 %vm31_vm0, %v153_v40  ;;  %679 = vmatpush3.msra.mxu0 %v1017_v44 }
  0xbd   :  { %v780_v41 = vpop.eup %779  ;;  %v157_v42 = vmul.f32 %v778_v21, %v927_v28  ;;  %680 = vmatprep.subr.mxu0 %v1024_v45  ;;  %728 = vmatprep.subr.mxu1 %v356_v25  ;;  %v355_v28 = vld [vmem:[%s1113_s2] sm:$0xff]  ;;  %s803_s2 = smov [#allocation2]  }
  0xbe   :  { %681 = vmatpush3.msra.mxu0 %v1024_v45  ;;  %v159_v24 = vmul.f32 %v780_v41, %v932_v29  ;;  %744 = vmatpush3.msra.mxu1 %v356_v25  ;;  %s537_s23 = sshll.u32 %s803_s2, 4  ;;  %s538_s23 = int_to_ptr.vmem [resolvable:$true] %s537_s23 }
  0xbf   :  { %653 = vmatmul.mubr.msk.f32.gmra.mxu0 %vm31_vm0, %v155_v20  ;;  %682 = vmatprep.subr.mxu0 %v1031_v46  ;;  %s781_s1 = scalar_lea.vmem %s538_s23, 2048  ;;  %p786_p1 = scmp.lt.s32.totalorder %s538_s23, %s538_s23 }
  0xc0   :  { %655 = vmatprep.mubr.msk.f32.mxu0 %vm31_vm0, %v157_v42  ;;  %683 = vmatpush3.msra.mxu0 %v1031_v46  ;;  %p782_p0 = scmp.ne.s32.totalorder %s538_s23, %s781_s1  ;;  %p787_p2 = scmp.lt.s32.totalorder %s781_s1, %s781_s1 }
  0xc1   :  { %684 = vmatprep.subr.mxu0 %v1038_v47  ;;  %729 = vmatprep.subr.mxu1 %v355_v28 }
  0xc2   :  { %685 = vmatpush3.msra.mxu0 %v1038_v47  ;;  %745 = vmatpush3.msra.mxu1 %v355_v28  ;;  %p788_p3 = por %p787_p2, %p786_p1 }
  0xc3   :  { %656 = vmatmul.mubr.msk.f32.gmra.mxu0 %vm31_vm0, %v159_v24  ;;  %686 = vmatprep.subr.mxu0 %v356_v25 }
  0xc4   :  { %687 = vmatpush3.msra.mxu0 %v356_v25  ;;  %p789_p4 = pnand %p788_p3, %p782_p0 }
  0xc5   :  { %688 = vmatprep.subr.mxu0 %v355_v28 }
  0xc6   :  { %689 = vmatpush3.msra.mxu0 %v355_v28 }
 0x167   :  { %v636_v29 = vpop.f32.mrf.mxu0 }
 0x169   :  { %v276_v43 = vpop.f32.mrf.mxu0 }
 0x16a   :  { %690 = vmatprep.mubr.f32.mxu0 %v276_v43 }
 0x16b   :  { %v639_v44 = vpop.f32.mrf.mxu0  ;;  %691 = vmatmul.mubr.f32.vlgmr.msra.gmra.mxu0 %v636_v29 }
 0x16d   :  { %v286_v45 = vpop.f32.mrf.mxu0 }
 0x16e   :  { %693 = vmatprep.mubr.f32.mxu0 %v286_v45 }
 0x16f   :  { %v642_v46 = vpop.f32.mrf.mxu0  ;;  %694 = vmatmul.mubr.f32.gmra.mxu0 %v639_v44 }
 0x171   :  { %v296_v47 = vpop.f32.mrf.mxu0 }
 0x172   :  { %696 = vmatprep.mubr.f32.mxu0 %v296_v47 }
 0x173   :  { %v645_v54 = vpop.f32.mrf.mxu0  ;;  %697 = vmatmul.mubr.f32.gmra.mxu0 %v642_v46 }
 0x175   :  { %v306_v55 = vpop.f32.mrf.mxu0 }
 0x176   :  { %699 = vmatprep.mubr.f32.mxu1 %v306_v55 }
 0x177   :  { %v648_v56 = vpop.f32.mrf.mxu0  ;;  %700 = vmatmul.mubr.f32.vlgmr.msra.gmra.mxu1 %v645_v54 }
 0x179   :  { %v316_v57 = vpop.f32.mrf.mxu0 }
 0x17a   :  { %702 = vmatprep.mubr.f32.mxu1 %v316_v57 }
 0x17b   :  { %v651_v58 = vpop.f32.mrf.mxu0  ;;  %703 = vmatmul.mubr.f32.gmra.mxu1 %v648_v56 }
 0x17d   :  { %v326_v59 = vpop.f32.mrf.mxu0 }
 0x17e   :  { %705 = vmatprep.mubr.f32.mxu1 %v326_v59 }
 0x17f   :  { %v654_v60 = vpop.f32.mrf.mxu0  ;;  %706 = vmatmul.mubr.f32.gmra.mxu1 %v651_v58 }
 0x181   :  { %v336_v61 = vpop.f32.mrf.mxu0 }
 0x182   :  { %708 = vmatprep.mubr.f32.mxu1 %v336_v61 }
 0x183   :  { %v657_v62 = vpop.f32.mrf.mxu0  ;;  %709 = vmatmul.mubr.f32.gmra.mxu1 %v654_v60 }
 0x185   :  { %v346_v63 = vpop.f32.mrf.mxu0 }
 0x186   :  { %711 = vmatprep.mubr.f32.mxu1 %v346_v63 }
 0x187   :  { %712 = vmatmul.mubr.f32.gmra.mxu1 %v657_v62 }
 0x22b   :  { %v692_v3 = vpop.f32.mrf.mxu0 }
 0x22c   :  { %517 = vst [vmem:[#allocation2 + $0x8] sm:$0xff] %v692_v3 }
 0x22d   :  { %v437_v4 = vpop.f32.mrf.mxu0 }
 0x22e   :  { %516 = vst [vmem:[#allocation2] sm:$0xff] %v437_v4 }
 0x22f   :  { %v695_v6 = vpop.f32.mrf.mxu0 }
 0x230   :  { %519 = vst [vmem:[#allocation2 + $0x18] sm:$0xff] %v695_v6 }
 0x231   :  { %v447_v7 = vpop.f32.mrf.mxu0 }
 0x232   :  { %518 = vst [vmem:[#allocation2 + $0x10] sm:$0xff] %v447_v7 }
 0x233   :  { %v698_v10 = vpop.f32.mrf.mxu0 }
 0x234   :  { %521 = vst [vmem:[#allocation2 + $0x28] sm:$0xff] %v698_v10 }
 0x235   :  { %v457_v11 = vpop.f32.mrf.mxu0 }
 0x236   :  { %520 = vst [vmem:[#allocation2 + $0x20] sm:$0xff] %v457_v11 }
 0x237   :  { %v701_v14 = vpop.f32.mrf.mxu1 }
 0x238   :  { %523 = vst [vmem:[#allocation2 + $0x38] sm:$0xff] %v701_v14 }
 0x239   :  { %v467_v15 = vpop.f32.mrf.mxu1 }
 0x23a   :  { %522 = vst [vmem:[#allocation2 + $0x30] sm:$0xff] %v467_v15 }
 0x23b   :  { %v704_v0 = vpop.f32.mrf.mxu1 }
 0x23c   :  { %525 = vst [vmem:[#allocation2 + $0x48] sm:$0xff] %v704_v0 }
 0x23d   :  { %v477_v18 = vpop.f32.mrf.mxu1 }
 0x23e   :  { %524 = vst [vmem:[#allocation2 + $0x40] sm:$0xff] %v477_v18 }
 0x23f   :  { %v707_v19 = vpop.f32.mrf.mxu1 }
 0x240   :  { %527 = vst [vmem:[#allocation2 + $0x58] sm:$0xff] %v707_v19 }
 0x241   :  { %v487_v22 = vpop.f32.mrf.mxu1 }
 0x242   :  { %526 = vst [vmem:[#allocation2 + $0x50] sm:$0xff] %v487_v22 }
 0x243   :  { %v710_v23 = vpop.f32.mrf.mxu1 }
 0x244   :  { %529 = vst [vmem:[#allocation2 + $0x68] sm:$0xff] %v710_v23 }
 0x245   :  { %v497_v26 = vpop.f32.mrf.mxu1 }
 0x246   :  { %528 = vst [vmem:[#allocation2 + $0x60] sm:$0xff] %v497_v26 }
 0x247   :  { %v713_v1 = vpop.f32.mrf.mxu1 }
 0x248   :  { %531 = vst [vmem:[#allocation2 + $0x78] sm:$0xff] %v713_v1 }
 0x249   :  { %v507_v27 = vpop.f32.mrf.mxu1 }
 0x24a   :  { %530 = vst [vmem:[#allocation2 + $0x70] sm:$0xff] %v507_v27 }
 0x24b   :  { %792 = shalt.err (!%p789_p4)
}
 0x24c   :  { %s804_s24 = smov 128   ;;  %s805_s25 = smov 8  }
 0x24d   :  { %543 = dma.vmem_to_hbm [thread:$0]  %s538_s23, 2048, %s1114_s3, [#allocation3], %s804_s24, %s804_s24, %s805_s25  }
 0x24e   :  { %801 = dma.done.wait [#allocation3], 2048  }
 0x24f   :  { %802 = vsyncadd [#allocation3], 4294965248 }
 0x250   :  { %547 = vsyncpa [#allocation3], 1 }

</bundles_post_ra>
